<compile_context>
chip_gen: v6e
topology: v6e:2x2x1
jax: 0.10.0
libtpu: 0.0.40
codegen_flags: <defaults>
</compile_context>

<pallas_src>
import jax
import jax.numpy as jnp
from jax.experimental import pallas as pl
from jax.experimental.pallas import tpu as pltpu

HIDDEN = 128   # hidden width of the MLP (fixed by the PyTorch module)
LANE = 128     # lane-dense output slab width (action_dim padded up to this)


def _round_up(n, m):
    return ((n + m - 1) // m) * m


def qnetwork_kernel(x_ref, w1_ref, b1_ref, w2_ref, b2_ref, w3_ref, b3_ref, o_ref):
    # x_ref: (TB, S_pad) bf16   weights: bf16 (in, out)   biases: (1, out) f32
    x = x_ref[...]

    # fc1: Linear(state_dim, 128) + ReLU   (MXU matmul, f32 accumulate)
    h1 = jnp.dot(x, w1_ref[...], preferred_element_type=jnp.float32)
    h1 = jnp.maximum(h1 + b1_ref[...], 0.0)

    # fc2: Linear(128, 128) + ReLU
    h2 = jnp.dot(h1.astype(jnp.bfloat16), w2_ref[...],
                 preferred_element_type=jnp.float32)
    h2 = jnp.maximum(h2 + b2_ref[...], 0.0)

    # fc3: Linear(128, action_dim) -- output columns padded to a 128-wide slab
    out = jnp.dot(h2.astype(jnp.bfloat16), w3_ref[...],
                  preferred_element_type=jnp.float32)
    o_ref[...] = (out + b3_ref[...]).astype(o_ref.dtype)


def qnetwork_forward(x, params, *, block_b=256):
    """x: (B, state_dim) float32. Returns (B, action_dim) float32 Q-values."""
    w1, b1 = params["w1"], params["b1"]
    w2, b2 = params["w2"], params["b2"]
    w3, b3 = params["w3"], params["b3"]
    action_dim = params["action_dim"]

    B, S = x.shape
    S_pad = w1.shape[0]
    assert S <= S_pad, "input state_dim exceeds parameter state_dim"

    # Batch tile: multiple of 16 (bf16 sublane packing), capped at block_b.
    TB = min(block_b, _round_up(max(B, 1), 16))
    B_pad = _round_up(B, TB)

    # Pad input rows/cols with zeros (padded w1 rows are zero too) and cast to
    # bf16 -- halves the streamed-x DMA bytes; accumulation stays f32 in-kernel.
    x_pad = jnp.zeros((B_pad, S_pad), jnp.bfloat16)
    x_pad = x_pad.at[:B, :S].set(x.astype(jnp.bfloat16))

    grid = (B_pad // TB,)

    # Weights/biases: full-extent blocks, constant index_map -> resident in VMEM.
    def resident(arr):
        return pl.BlockSpec(arr.shape, lambda i: (0,) * arr.ndim)

    out_pad = pl.pallas_call(
        qnetwork_kernel,
        out_shape=jax.ShapeDtypeStruct((B_pad, LANE), jnp.float32),
        grid_spec=pltpu.PrefetchScalarGridSpec(
            num_scalar_prefetch=0,
            grid=grid,
            in_specs=[
                pl.BlockSpec((TB, S_pad), lambda i: (i, 0)),  # x tiles stream
                resident(w1), resident(b1),
                resident(w2), resident(b2),
                resident(w3), resident(b3),
            ],
            out_specs=pl.BlockSpec((TB, LANE), lambda i: (i, 0)),
        ),
        compiler_params=pltpu.CompilerParams(
            dimension_semantics=("parallel",),  # lets v7x shard batch over 2 TCs
        ),
    )(x_pad, w1, b1, w2, b2, w3, b3)

    # Strip batch padding and the lane-dense output padding.
    return out_pad[:B, :action_dim]


def init_params(key, state_dim, action_dim, hidden=HIDDEN):
    """Deterministic synthetic parameters (PyTorch-Linear-style uniform init).

    Weights are stored as (in, out) so the kernel computes y = x @ W + b
    (equivalent to PyTorch's x @ W.T + b). fc1 input rows are padded to a
    multiple of 8, fc3 output columns are padded to LANE (=128) with zeros so
    the kernel output is lane-dense. Matmul weights are kept in bf16.
    """
    keys = jax.random.split(key, 6)
    S_pad = _round_up(state_dim, 8)

    def uniform(k, shape, fan_in):
        bound = 1.0 / jnp.sqrt(float(fan_in))
        return jax.random.uniform(k, shape, jnp.float32, -bound, bound)

    # fc1 (pad unused input rows with zeros)
    w1 = jnp.zeros((S_pad, hidden), jnp.float32)
    w1 = w1.at[:state_dim, :].set(uniform(keys[0], (state_dim, hidden), state_dim))
    b1 = uniform(keys[1], (1, hidden), state_dim)

    # fc2
    w2 = uniform(keys[2], (hidden, hidden), hidden)
    b2 = uniform(keys[3], (1, hidden), hidden)

    # fc3 (pad unused output columns with zeros -> lane-dense 128-wide slab)
    w3 = jnp.zeros((hidden, LANE), jnp.float32)
    w3 = w3.at[:, :action_dim].set(uniform(keys[4], (hidden, action_dim), hidden))
    b3 = jnp.zeros((1, LANE), jnp.float32)
    b3 = b3.at[:, :action_dim].set(uniform(keys[5], (1, action_dim), hidden))

    return {
        "w1": w1.astype(jnp.bfloat16), "b1": b1,
        "w2": w2.astype(jnp.bfloat16), "b2": b2,
        "w3": w3.astype(jnp.bfloat16), "b3": b3,
        "action_dim": action_dim,
    }


def reference_forward(x, params):
    """Plain-JAX f32 reference with the same (bf16-quantized) weights."""
    S = x.shape[1]
    A = params["action_dim"]
    w1 = params["w1"][:S, :].astype(jnp.float32)
    w2 = params["w2"].astype(jnp.float32)
    w3 = params["w3"][:, :A].astype(jnp.float32)
    h1 = jnp.maximum(x @ w1 + params["b1"], 0.0)
    h2 = jnp.maximum(h1 @ w2 + params["b2"], 0.0)
    return h2 @ w3 + params["b3"][:, :A]


if __name__ == "__main__":
    key = jax.random.PRNGKey(0)
    k_x, k_p = jax.random.split(key)

    batch, state_dim, action_dim = 2, 8, 4
    x = jax.random.normal(k_x, (batch, state_dim), dtype=jnp.float32)
    params = init_params(k_p, state_dim, action_dim)

    out = qnetwork_forward(x, params)
    out = jax.block_until_ready(out)

    ref = reference_forward(x, params)
    assert out.shape == (batch, action_dim)
    # bf16 matmul operands (f32 accumulation) vs f32 reference: small tolerance.
    assert jnp.allclose(out, ref, atol=2e-2, rtol=2e-2)

    print("KERNEL_OK")
</pallas_src>

<mosaic_0001>
module attributes {stable_mosaic.version = 11 : i64} {
  func.func @qnetwork_kernel(%arg0: i32, %arg1: memref<16x8xbf16, #tpu.memory_space<vmem>>, %arg2: memref<8x128xbf16, #tpu.memory_space<vmem>>, %arg3: memref<1x128xf32, #tpu.memory_space<vmem>>, %arg4: memref<128x128xbf16, #tpu.memory_space<vmem>>, %arg5: memref<1x128xf32, #tpu.memory_space<vmem>>, %arg6: memref<128x128xbf16, #tpu.memory_space<vmem>>, %arg7: memref<1x128xf32, #tpu.memory_space<vmem>>, %arg8: memref<16x128xf32, #tpu.memory_space<vmem>>) attributes {dimension_semantics = [#tpu.dimension_semantics<parallel>], iteration_bounds = array<i64: 1>, scalar_prefetch = 0 : i64, scratch_operands = 0 : i64, tpu.core_type = #tpu.core_type<tc>, window_params = [{transform_indices = @transform_0, window_bounds = array<i64: 16, 8>}, {pipeline_mode = #tpu.pipeline_mode<synchronous>, transform_indices = @transform_1, window_bounds = array<i64: 8, 128>}, {pipeline_mode = #tpu.pipeline_mode<synchronous>, transform_indices = @transform_2, window_bounds = array<i64: 1, 128>}, {pipeline_mode = #tpu.pipeline_mode<synchronous>, transform_indices = @transform_3, window_bounds = array<i64: 128, 128>}, {pipeline_mode = #tpu.pipeline_mode<synchronous>, transform_indices = @transform_4, window_bounds = array<i64: 1, 128>}, {pipeline_mode = #tpu.pipeline_mode<synchronous>, transform_indices = @transform_5, window_bounds = array<i64: 128, 128>}, {pipeline_mode = #tpu.pipeline_mode<synchronous>, transform_indices = @transform_6, window_bounds = array<i64: 1, 128>}, {transform_indices = @transform_7, window_bounds = array<i64: 16, 128>}]} {
    %c0 = arith.constant 0 : index
    %c0_0 = arith.constant 0 : index
    %0 = vector.load %arg1[%c0, %c0_0] : memref<16x8xbf16, #tpu.memory_space<vmem>>, vector<16x8xbf16>
    %c0_1 = arith.constant 0 : index
    %c0_2 = arith.constant 0 : index
    %1 = vector.load %arg2[%c0_1, %c0_2] : memref<8x128xbf16, #tpu.memory_space<vmem>>, vector<8x128xbf16>
    %cst = arith.constant dense<0.000000e+00> : vector<16x128xf32>
    %2 = tpu.matmul %0, %1, %cst {dimension_numbers = #tpu.dot_dimension_numbers<[1], [0], [0], [1], [0, 0, 1, 1], [], []>} : vector<16x8xbf16>, vector<8x128xbf16>, vector<16x128xf32> -> vector<16x128xf32>
    %c0_3 = arith.constant 0 : index
    %c0_4 = arith.constant 0 : index
    %3 = vector.load %arg3[%c0_3, %c0_4] : memref<1x128xf32, #tpu.memory_space<vmem>>, vector<1x128xf32>
    %4 = vector.broadcast %3 : vector<1x128xf32> to vector<16x128xf32>
    %5 = arith.addf %2, %4 : vector<16x128xf32>
    %cst_5 = arith.constant 0.000000e+00 : f32
    %6 = vector.broadcast %cst_5 : f32 to vector<16x128xf32>
    %7 = arith.maximumf %5, %6 : vector<16x128xf32>
    %8 = arith.truncf %7 : vector<16x128xf32> to vector<16x128xbf16>
    %c0_6 = arith.constant 0 : index
    %c0_7 = arith.constant 0 : index
    %9 = vector.load %arg4[%c0_6, %c0_7] : memref<128x128xbf16, #tpu.memory_space<vmem>>, vector<128x128xbf16>
    %cst_8 = arith.constant dense<0.000000e+00> : vector<16x128xf32>
    %10 = tpu.matmul %8, %9, %cst_8 {dimension_numbers = #tpu.dot_dimension_numbers<[1], [0], [0], [1], [0, 0, 1, 1], [], []>} : vector<16x128xbf16>, vector<128x128xbf16>, vector<16x128xf32> -> vector<16x128xf32>
    %c0_9 = arith.constant 0 : index
    %c0_10 = arith.constant 0 : index
    %11 = vector.load %arg5[%c0_9, %c0_10] : memref<1x128xf32, #tpu.memory_space<vmem>>, vector<1x128xf32>
    %12 = vector.broadcast %11 : vector<1x128xf32> to vector<16x128xf32>
    %13 = arith.addf %10, %12 : vector<16x128xf32>
    %cst_11 = arith.constant 0.000000e+00 : f32
    %14 = vector.broadcast %cst_11 : f32 to vector<16x128xf32>
    %15 = arith.maximumf %13, %14 : vector<16x128xf32>
    %16 = arith.truncf %15 : vector<16x128xf32> to vector<16x128xbf16>
    %c0_12 = arith.constant 0 : index
    %c0_13 = arith.constant 0 : index
    %17 = vector.load %arg6[%c0_12, %c0_13] : memref<128x128xbf16, #tpu.memory_space<vmem>>, vector<128x128xbf16>
    %cst_14 = arith.constant dense<0.000000e+00> : vector<16x128xf32>
    %18 = tpu.matmul %16, %17, %cst_14 {dimension_numbers = #tpu.dot_dimension_numbers<[1], [0], [0], [1], [0, 0, 1, 1], [], []>} : vector<16x128xbf16>, vector<128x128xbf16>, vector<16x128xf32> -> vector<16x128xf32>
    %c0_15 = arith.constant 0 : index
    %c0_16 = arith.constant 0 : index
    %19 = vector.load %arg7[%c0_15, %c0_16] : memref<1x128xf32, #tpu.memory_space<vmem>>, vector<1x128xf32>
    %20 = vector.broadcast %19 : vector<1x128xf32> to vector<16x128xf32>
    %21 = arith.addf %18, %20 : vector<16x128xf32>
    %c0_17 = arith.constant 0 : index
    %c0_18 = arith.constant 0 : index
    %22 = vector.load %arg8[%c0_17, %c0_18] : memref<16x128xf32, #tpu.memory_space<vmem>>, vector<16x128xf32>
    tpu.vector_store %arg8[%c0_17, %c0_18], %21 {strides = array<i32>} : memref<16x128xf32, #tpu.memory_space<vmem>>, vector<16x128xf32>,
    return
  }
  func.func @transform_0(%arg0: i32) -> (i32, i32) {
    %c0_i32 = arith.constant 0 : i32
    %c0_i32_0 = arith.constant 0 : i32
    return %arg0, %c0_i32 : i32, i32
  }
  func.func @transform_1(%arg0: i32) -> (i32, i32) {
    %c0_i32 = arith.constant 0 : i32
    %c0_i32_0 = arith.constant 0 : i32
    %c0_i32_1 = arith.constant 0 : i32
    return %c0_i32, %c0_i32_0 : i32, i32
  }
  func.func @transform_2(%arg0: i32) -> (i32, i32) {
    %c0_i32 = arith.constant 0 : i32
    %c0_i32_0 = arith.constant 0 : i32
    %c0_i32_1 = arith.constant 0 : i32
    return %c0_i32, %c0_i32_0 : i32, i32
  }
  func.func @transform_3(%arg0: i32) -> (i32, i32) {
    %c0_i32 = arith.constant 0 : i32
    %c0_i32_0 = arith.constant 0 : i32
    %c0_i32_1 = arith.constant 0 : i32
    return %c0_i32, %c0_i32_0 : i32, i32
  }
  func.func @transform_4(%arg0: i32) -> (i32, i32) {
    %c0_i32 = arith.constant 0 : i32
    %c0_i32_0 = arith.constant 0 : i32
    %c0_i32_1 = arith.constant 0 : i32
    return %c0_i32, %c0_i32_0 : i32, i32
  }
  func.func @transform_5(%arg0: i32) -> (i32, i32) {
    %c0_i32 = arith.constant 0 : i32
    %c0_i32_0 = arith.constant 0 : i32
    %c0_i32_1 = arith.constant 0 : i32
    return %c0_i32, %c0_i32_0 : i32, i32
  }
  func.func @transform_6(%arg0: i32) -> (i32, i32) {
    %c0_i32 = arith.constant 0 : i32
    %c0_i32_0 = arith.constant 0 : i32
    %c0_i32_1 = arith.constant 0 : i32
    return %c0_i32, %c0_i32_0 : i32, i32
  }
  func.func @transform_7(%arg0: i32) -> (i32, i32) {
    %c0_i32 = arith.constant 0 : i32
    %c0_i32_0 = arith.constant 0 : i32
    return %arg0, %c0_i32 : i32, i32
  }
}

</mosaic_0001>

<bundles_post_ra>
// kernel: tpu_custom_call.1
= control target key start
LH: loop header
LB: loop body
LE: loop exit
PB: predicated region body
PF: predicated region fallthrough
CT: control target
= control target key end

     0   :  { %12 = vsyncpa [#allocation3], 0  ;;  %s645_s0 = inlined_call_operand.vmem [shape: bf16[16,8], index: 0, kind: input, shape index: {}]   ;;  %s646_s1 = inlined_call_operand.vmem [shape: bf16[8,128], index: 1, kind: input, shape index: {}]   ;;  %s647_s2 = inlined_call_operand.vmem [shape: f32[1,128], index: 2, kind: input, shape index: {}]   ;;  %s648_s3 = inlined_call_operand.hbm [shape: bf16[128,128], index: 3, kind: input, shape index: {}]   ;;  %s649_s4 = inlined_call_operand.vmem [shape: f32[1,128], index: 4, kind: input, shape index: {}]   ;;  %s650_s5 = inlined_call_operand.hbm [shape: bf16[128,128], index: 5, kind: input, shape index: {}]   ;;  %s651_s6 = inlined_call_operand.vmem [shape: f32[1,128], index: 6, kind: input, shape index: {}]   ;;  %s652_s7 = inlined_call_operand.hbm [shape: f32[16,128], index: 7, kind: output, shape index: {}]  }
   0x1   :  { %13 = vsyncpa [#allocation6], 0 }
   0x2   :  { %14 = vsyncpa [#allocation4], 0  ;;  %s549_s24 = smov [#allocation2]  }
   0x3   :  { %s26_s25 = sshll.u32 %s549_s24, 4  ;;  %s27_s25 = int_to_ptr.vmem [resolvable:$true] %s26_s25 }
   0x4   :  { %s491_s26 = scalar_lea.vmem %s27_s25, 1024  ;;  %p496_p1 = scmp.lt.s32.totalorder %s27_s25, %s27_s25 }
   0x5   :  { %p492_p0 = scmp.ne.s32.totalorder %s27_s25, %s491_s26  ;;  %p497_p2 = scmp.lt.s32.totalorder %s491_s26, %s491_s26 }
   0x7   :  { %p498_p3 = por %p497_p2, %p496_p1 }
   0x9   :  { %p499_p4 = pnand %p498_p3, %p492_p0 }
   0xb   :  { %502 = shalt.err (!%p499_p4)
}
   0xc   :  { %s550_s27 = smov 64   ;;  %s551_s28 = smov 4  }
   0xd   :  { %32 = dma.hbm_to_vmem [thread:$0]  %s648_s3, 1024, %s27_s25, [#allocation3], %s550_s27, %s550_s27, %s551_s28  }
   0xe   :  { %s552_s8 = smov [#allocation5]  }
   0xf   :  { %s40_s9 = sshll.u32 %s552_s8, 4  ;;  %s41_s9 = int_to_ptr.vmem [resolvable:$true] %s40_s9 }
  0x10   :  { %s511_s10 = scalar_lea.vmem %s41_s9, 1024  ;;  %p516_p6 = scmp.lt.s32.totalorder %s41_s9, %s41_s9 }
  0x11   :  { %p512_p5 = scmp.ne.s32.totalorder %s41_s9, %s511_s10  ;;  %p517_p7 = scmp.lt.s32.totalorder %s511_s10, %s511_s10 }
  0x13   :  { %p518_p8 = por %p517_p7, %p516_p6 }
  0x15   :  { %p519_p9 = pnand %p518_p8, %p512_p5 }
  0x17   :  { %522 = shalt.err (!%p519_p9)
}
  0x18   :  { %46 = dma.hbm_to_vmem [thread:$0]  %s650_s5, 1024, %s41_s9, [#allocation6], %s550_s27, %s550_s27, %s551_s28  }
  0x19   :  { %543 = dma.done.wait [#allocation3], 1024  }
  0x1a   :  { %544 = vsyncadd [#allocation3], 4294966272 }
  0x1b   :  { %545 = dma.done.wait [#allocation6], 1024  }
  0x1c   :  { %546 = vsyncadd [#allocation6], 4294966272  ;;  %v553_v0 = vmov 0.0   ;;  %vm554_vm0 = vmmov 0   ;;  %vm75_vm1 = vcmask 1043456   ;;  %v466_v3 = vld [vmem:[%s645_s0] sm:$0xff]  }
  0x1d   :  { %411 = vmatprep.subr.bf16.mxu0 %v553_v0  ;;  %413 = vmatprep.mubr.msk.bf16.mxu0 %vm554_vm0, %v553_v0  ;;  %v58_v1 = vld [vmem:[%s646_s1] sm:$0xf]  ;;  %vm71_vm2 = vcmask 64512   ;;  %v467_v4 = vld [vmem:[#allocation2 + $0x38] sm:$0xff]   ;;  %v468_v5 = vld [vmem:[#allocation2 + $0x30] sm:$0xff]   ;;  %s555_s18 = smov [#allocation7]  }
  0x1e   :  { %417 = vmatprep.subr.bf16.mxu1 %v553_v0  ;;  %433 = vmatprep.mubr.msk.bf16.mxu1 %vm554_vm0, %v553_v0  ;;  %v77_v2 = vsel %vm75_vm1, %v58_v1, 0  ;;  %v469_v6 = vld [vmem:[#allocation2 + $0x28] sm:$0xff]   ;;  %v470_v7 = vld [vmem:[#allocation2 + $0x20] sm:$0xff]   ;;  %v471_v8 = vld [vmem:[#allocation2 + $0x18] sm:$0xff]   ;;  %s357_s19 = sshll.u32 %s555_s18, 4  ;;  %s358_s19 = int_to_ptr.vmem [resolvable:$true] %s357_s19 }
  0x1f   :  { %412 = vmatpush3.bf16.msra.mxu0 %v77_v2  ;;  %418 = vmatpush3.bf16.msra.mxu1 %v467_v4  ;;  %v472_v9 = vld [vmem:[#allocation2 + $0x10] sm:$0xff]   ;;  %v473_v10 = vld [vmem:[#allocation2 + $0x8] sm:$0xff]   ;;  %v474_v11 = vld [vmem:[#allocation2] sm:$0xff]   ;;  %p528_p11 = scmp.lt.s32.totalorder %s358_s19, %s358_s19 }
  0x20   :  { %437 = vmatprep.subr.bf16.mxu0 %v553_v0  ;;  %419 = vmatprep.subr.bf16.mxu1 %v553_v0  ;;  %v475_v12 = vld [vmem:[#allocation5 + $0x38] sm:$0xff]   ;;  %v476_v13 = vld [vmem:[#allocation5 + $0x30] sm:$0xff]   ;;  %v477_v14 = vld [vmem:[#allocation5 + $0x28] sm:$0xff]  }
  0x21   :  { %v478_v15 = vld [vmem:[#allocation5 + $0x20] sm:$0xff]   ;;  %v479_v16 = vld [vmem:[#allocation5 + $0x18] sm:$0xff]   ;;  %v480_v27 = vld [vmem:[#allocation5 + $0x10] sm:$0xff]  }
  0x22   :  { %414 = vmatmul.mubr.msk.bf16.vlgmr.msra.gmra.mxu0 %vm71_vm2, %v466_v3  ;;  %v370_v17 = vld [vmem:[%s647_s2] ss:$0 sm:$0xff]  ;;  %v481_v28 = vld [vmem:[#allocation5 + $0x8] sm:$0xff]  }
  0x23   :  { %453 = vmatprep.mubr.msk.bf16.mxu0 %vm554_vm0, %v553_v0  ;;  %420 = vmatpush3.bf16.msra.mxu1 %v468_v5  ;;  %v482_v29 = vld [vmem:[#allocation5] sm:$0xff]  }
  0x24   :  { %421 = vmatprep.subr.bf16.mxu1 %v553_v0  ;;  %438 = vmatpush3.bf16.msra.mxu0 %v475_v12  ;;  %v373_v30 = vld [vmem:[%s649_s4] ss:$0 sm:$0xff]  ;;  %s523_s4 = scalar_lea.vmem %s358_s19, 256 }
  0x25   :  { %439 = vmatprep.subr.bf16.mxu0 %v553_v0  ;;  %v382_v40 = vld [vmem:[%s651_s6] ss:$0 sm:$0xff]  ;;  %p524_p10 = scmp.ne.s32.totalorder %s358_s19, %s523_s4  ;;  %p529_p12 = scmp.lt.s32.totalorder %s523_s4, %s523_s4 }
  0x27   :  { %422 = vmatpush3.bf16.msra.mxu1 %v469_v6  ;;  %p530_p13 = por %p529_p12, %p528_p11 }
  0x28   :  { %423 = vmatprep.subr.bf16.mxu1 %v553_v0  ;;  %440 = vmatpush3.bf16.msra.mxu0 %v476_v13 }
  0x29   :  { %441 = vmatprep.subr.bf16.mxu0 %v553_v0  ;;  %p531_p0 = pnand %p530_p13, %p524_p10 }
  0x2b   :  { %424 = vmatpush3.bf16.msra.mxu1 %v470_v7 }
  0x2c   :  { %425 = vmatprep.subr.bf16.mxu1 %v553_v0  ;;  %442 = vmatpush3.bf16.msra.mxu0 %v477_v14 }
  0x2d   :  { %443 = vmatprep.subr.bf16.mxu0 %v553_v0 }
  0x2f   :  { %426 = vmatpush3.bf16.msra.mxu1 %v471_v8 }
  0x30   :  { %427 = vmatprep.subr.bf16.mxu1 %v553_v0  ;;  %444 = vmatpush3.bf16.msra.mxu0 %v478_v15 }
  0x31   :  { %445 = vmatprep.subr.bf16.mxu0 %v553_v0 }
  0x33   :  { %428 = vmatpush3.bf16.msra.mxu1 %v472_v9 }
  0x34   :  { %429 = vmatprep.subr.bf16.mxu1 %v553_v0  ;;  %446 = vmatpush3.bf16.msra.mxu0 %v479_v16 }
  0x35   :  { %447 = vmatprep.subr.bf16.mxu0 %v553_v0 }
  0x37   :  { %430 = vmatpush3.bf16.msra.mxu1 %v473_v10 }
  0x38   :  { %431 = vmatprep.subr.bf16.mxu1 %v553_v0  ;;  %448 = vmatpush3.bf16.msra.mxu0 %v480_v27 }
  0x39   :  { %449 = vmatprep.subr.bf16.mxu0 %v553_v0 }
  0x3b   :  { %432 = vmatpush3.bf16.msra.mxu1 %v474_v11 }
  0x3c   :  { %450 = vmatpush3.bf16.msra.mxu0 %v481_v28 }
  0x3d   :  { %451 = vmatprep.subr.bf16.mxu0 %v553_v0 }
  0x40   :  { %452 = vmatpush3.bf16.msra.mxu0 %v482_v29 }
  0xe2   :  { %v113_v18 = vpop.f32.mrf.mxu0 }
  0xe3   :  { %v114_v20 = vadd.f32 %v370_v17, %v113_v18 }
  0xe4   :  { %v415_v19 = vpop.f32.mrf.mxu0 }
  0xe5   :  { %v120_v24 = vmax.f32 %v114_v20, 0.0 }
  0xe6   :  { %v116_v21 = vpop.f32.mrf.mxu0 }
  0xe7   :  { %v117_v22 = vadd.f32 %v370_v17, %v116_v21 }
  0xe8   :  { %v416_v23 = vpop.f32.mrf.mxu0 }
  0xe9   :  { %v121_v25 = vmax.f32 %v117_v22, 0.0 }
  0xeb   :  { %v122_v26 = vpack.c.bf16 %v121_v25, %v120_v24 }
  0xed   :  { %434 = vmatmul.mubr.bf16.vlgmr.msra.gmra.mxu1 %v122_v26 }
 0x1ad   :  { %v228_v31 = vpop.f32.mrf.mxu1 }
 0x1ae   :  { %v229_v33 = vadd.f32 %v373_v30, %v228_v31 }
 0x1af   :  { %v435_v32 = vpop.f32.mrf.mxu1 }
 0x1b0   :  { %v235_v37 = vmax.f32 %v229_v33, 0.0 }
 0x1b1   :  { %v231_v34 = vpop.f32.mrf.mxu1 }
 0x1b2   :  { %v232_v35 = vadd.f32 %v373_v30, %v231_v34 }
 0x1b3   :  { %v436_v36 = vpop.f32.mrf.mxu1 }
 0x1b4   :  { %v236_v38 = vmax.f32 %v232_v35, 0.0 }
 0x1b6   :  { %v237_v39 = vpack.c.bf16 %v236_v38, %v235_v37 }
 0x1b8   :  { %454 = vmatmul.mubr.bf16.vlgmr.msra.gmra.mxu0 %v237_v39 }
 0x278   :  { %v343_v41 = vpop.f32.mrf.mxu0 }
 0x279   :  { %v344_v42 = vadd.f32 %v382_v40, %v343_v41 }
 0x27a   :  { %v455_v43 = vpop.f32.mrf.mxu0 }
 0x27b   :  { %350 = vst [vmem:[#allocation7] sm:$0xff] %v344_v42 }
 0x27c   :  { %v346_v44 = vpop.f32.mrf.mxu0 }
 0x27d   :  { %v347_v45 = vadd.f32 %v382_v40, %v346_v44 }
 0x27e   :  { %v456_v46 = vpop.f32.mrf.mxu0 }
 0x27f   :  { %351 = vst [vmem:[#allocation7 + $0x8] sm:$0xff] %v347_v45 }
 0x280   :  { %534 = shalt.err (!%p531_p0)
}
 0x281   :  { %s556_s20 = smov 128   ;;  %s557_s6 = smov 8  }
 0x282   :  { %363 = dma.vmem_to_hbm [thread:$0]  %s358_s19, 256, %s652_s7, [#allocation4], %s556_s20, %s556_s20, %s557_s6  }
 0x283   :  { %547 = dma.done.wait [#allocation4], 256  }
 0x284   :  { %548 = vsyncadd [#allocation4], 4294967040 }
 0x285   :  { %367 = vsyncpa [#allocation3], 1 }
 0x286   :  { %368 = vsyncpa [#allocation6], 1 }
 0x287   :  { %369 = vsyncpa [#allocation4], 1 }

</bundles_post_ra>
